<compile_context>
chip_gen: v7x
topology: tpu7x:2x2x1
jax: 0.10.0
libtpu: 0.0.40
codegen_flags: <defaults>
</compile_context>

<pallas_src>
import functools

import jax
import jax.numpy as jnp
from jax.experimental import pallas as pl
from jax.experimental.pallas import tpu as pltpu

N_BITS = 8
FULL_LVLS = 2 ** N_BITS
HALF_LVLS = (FULL_LVLS - 2) / 2.0  # 127.0


def _round_up(v, m):
    return -(-v // m) * m


def _choose_tile_and_pad(dim, preferred, align):
    """Return (tile, padded_dim): tile is a multiple of `align`, <= max(preferred,
    align), and divides padded_dim >= dim (so block shapes are always legal)."""
    padded = _round_up(dim, align)
    if padded <= preferred:
        return padded, padded
    t = (preferred // align) * align
    while t >= align:
        if padded % t == 0:
            return t, padded
        t -= align
    # No clean divisor: pad the dimension up to a multiple of `preferred` instead
    # of silently falling back to a full-array (possibly VMEM-busting) block.
    t = (preferred // align) * align
    return t, _round_up(dim, t)


def _vmem_budget_bytes():
    try:
        cap = pltpu.get_tpu_info().vmem_capacity_bytes
    except Exception:
        cap = 64 * 1024 * 1024  # conservative (v7x-sized) fallback
    return int(cap) * 3 // 4


def prepare_custom_block_weight(weight, step_size=None, *, tk_preferred=512):
    """One-time (per weight update) prep, cacheable alongside the module's step_size.

    Returns (codes_t, step, n_valid, k_valid, tk) where codes_t is the transposed,
    zero-padded bf16 integer-code weight of shape (k_pad, n_pad)."""
    N, K = weight.shape
    w = weight.astype(jnp.float32)
    if step_size is None:
        # __reset_stepsize__: step = max|W| / half_lvls (guard against all-zero W).
        absmax = jnp.max(jnp.abs(w))
        step_size = jnp.where(absmax > 0, absmax, jnp.float32(1.0)) / jnp.float32(HALF_LVLS)
    step = jnp.asarray(step_size, jnp.float32).reshape(())
    step = jnp.where(step > 0, step, jnp.float32(1.0))  # guard stale/zero caller step

    # hardtanh clamp -> round(w/step): integer codes in [-127, 127], exact in bf16.
    lim = jnp.float32(HALF_LVLS) * step
    codes = jnp.round(jnp.clip(w, -lim, lim) / step).astype(jnp.bfloat16)

    n_pad = _round_up(N, 128)
    tk, k_pad = _choose_tile_and_pad(K, tk_preferred, 128)
    codes_t = jnp.zeros((k_pad, n_pad), jnp.bfloat16).at[:K, :N].set(codes.T)
    return codes_t, step, N, K, tk


def _custom_block_kernel(step_ref, x_ref, w_ref, o_ref, *, n_valid, n_pad):
    # step_ref: (1,)         f32 SMEM (scalar prefetch)
    # x_ref:    (tm, tk)     f32  -> cast to bf16 in-kernel
    # w_ref:    (tk, n_pad)  bf16 integer codes (pre-quantized, transposed)
    # o_ref:    (tm, n_pad)  f32  (resident across the K axis: accumulator + output)
    k_idx = pl.program_id(1)

    prod = jnp.dot(x_ref[...].astype(jnp.bfloat16), w_ref[...],
                   preferred_element_type=jnp.float32)

    @pl.when(k_idx == 0)
    def _():
        o_ref[...] = prod

    @pl.when(k_idx != 0)
    def _():
        o_ref[...] += prod

    @pl.when(k_idx == pl.num_programs(1) - 1)
    def _():
        # Mask padded columns on the code-domain accumulator and fold the scalar
        # `step` into the exp argument; exact normalization (once per B tile).
        acc = o_ref[...]
        if n_valid < n_pad:
            col = jax.lax.broadcasted_iota(jnp.int32, acc.shape, 1)
            acc = jnp.where(col < n_valid, acc, -jnp.inf)
        m = jnp.max(acc, axis=-1, keepdims=True)
        e = jnp.exp((acc - m) * step_ref[0])
        o_ref[...] = e / jnp.sum(e, axis=-1, keepdims=True)


def custom_block_forward(x, weight=None, step_size=None, *, prepared=None):
    """Pallas CustomBlock.forward (inf_with_weight=False). Pass `prepared` (from
    prepare_custom_block_weight) to amortize weight quantization across calls."""
    if prepared is None:
        prepared = prepare_custom_block_weight(weight, step_size)
    codes_t, step, n_valid, k_valid, tk = prepared
    k_pad, n_pad = codes_t.shape

    B, K = x.shape
    assert K == k_valid, (K, k_valid)

    x = x.astype(jnp.float32)
    if K != k_pad:
        x = jnp.pad(x, ((0, 0), (0, k_pad - K)))

    # tm: largest tile whose double-buffered x tile + bf16 weight slab + resident
    # f32 output block fit the chip's VMEM budget (grows toward MXU-bound on the
    # 128 MiB parts; automatically re-derived for v7x's 64 MiB).
    budget = _vmem_budget_bytes()
    w_bytes = 2 * tk * n_pad * 2
    tm, b_pad = 8, _round_up(B, 8)
    for tm_pref in (1024, 512, 256, 128, 64, 32, 16, 8):
        tm_c, b_pad_c = _choose_tile_and_pad(B, tm_pref, 8)
        used = w_bytes + 2 * tm_c * tk * 4 + 2 * tm_c * n_pad * 4
        if used <= budget:
            tm, b_pad = tm_c, b_pad_c
            break
    # TODO(synk): on v7x (2 TensorCores) prefer tm such that b_pad//tm >= 2 so the
    # "parallel" B axis feeds both cores, and tile N with an online softmax so VMEM
    # no longer scales with out_features.

    if B != b_pad:
        x = jnp.pad(x, ((0, b_pad - B), (0, 0)))

    grid = (b_pad // tm, k_pad // tk)
    kernel = functools.partial(_custom_block_kernel, n_valid=n_valid, n_pad=n_pad)

    out = pl.pallas_call(
        kernel,
        out_shape=jax.ShapeDtypeStruct((b_pad, n_pad), jnp.float32),
        grid_spec=pltpu.PrefetchScalarGridSpec(
            num_scalar_prefetch=1,
            grid=grid,
            in_specs=[
                pl.BlockSpec((tm, tk), lambda i, k, s: (i, k)),     # x tile (f32)
                pl.BlockSpec((tk, n_pad), lambda i, k, s: (k, 0)),  # bf16 code slab
            ],
            out_specs=pl.BlockSpec((tm, n_pad), lambda i, k, s: (i, 0)),
        ),
        compiler_params=pltpu.CompilerParams(
            dimension_semantics=("parallel", "arbitrary"),
            vmem_limit_bytes=budget,
        ),
    )(step.reshape(1), x, codes_t)

    if b_pad != B or n_pad != n_valid:
        out = out[:B, :n_valid]
    return out


def _reference(x, weight):
    # Pure-JAX f32 reference mirroring the PyTorch forward.
    step = jnp.max(jnp.abs(weight)) / HALF_LVLS
    lim = HALF_LVLS * step
    wq = jnp.round(jnp.clip(weight, -lim, lim) / step) * step
    return jax.nn.softmax(x @ wq.T, axis=-1)


if __name__ == "__main__":
    key = jax.random.PRNGKey(0)

    def run_case(B, in_features, out_features, case_id):
        k_x, k_w = jax.random.split(jax.random.fold_in(key, case_id))
        x = jax.random.normal(k_x, (B, in_features), dtype=jnp.float32)
        # kaiming_uniform_(a=sqrt(5)) on (out, in): bound = 1/sqrt(fan_in)
        bound = 1.0 / (in_features ** 0.5)
        weight = jax.random.uniform(k_w, (out_features, in_features),
                                    dtype=jnp.float32, minval=-bound, maxval=bound)

        out = jax.block_until_ready(custom_block_forward(x, weight))
        ref = _reference(x, weight)

        assert out.shape == (B, out_features)
        # bf16 activations on the MXU -> relaxed tolerance vs the f32 reference.
        err = float(jnp.max(jnp.abs(out - ref)))
        assert jnp.allclose(out, ref, atol=2e-2, rtol=2e-2), err
        assert jnp.allclose(jnp.sum(out, axis=-1), 1.0, atol=1e-4)

    run_case(8, 32, 16, 1)      # tiny shapes from the module spec (single block)
    run_case(8, 640, 192, 2)    # multi-step K accumulation + masked N padding

    print("KERNEL_OK")
</pallas_src>

<mosaic_0001>
module attributes {stable_mosaic.version = 11 : i64} {
  func.func @_custom_block_kernel(%arg0: i32, %arg1: i32, %arg2: memref<1xf32, #tpu.memory_space<smem>>, %arg3: memref<8x128xf32, #tpu.memory_space<vmem>>, %arg4: memref<128x128xbf16, #tpu.memory_space<vmem>>, %arg5: memref<8x128xf32, #tpu.memory_space<vmem>>) attributes {dimension_semantics = [#tpu.dimension_semantics<parallel>, #tpu.dimension_semantics<arbitrary>], iteration_bounds = array<i64: 1, 1>, scalar_prefetch = 1 : i64, scratch_operands = 0 : i64, tpu.core_type = #tpu.core_type<tc>, window_params = [{transform_indices = @transform_0, window_bounds = array<i64: 8, 128>}, {transform_indices = @transform_1, window_bounds = array<i64: 128, 128>}, {transform_indices = @transform_2, window_bounds = array<i64: 8, 128>}]} {
    %c0 = arith.constant 0 : index
    %c0_0 = arith.constant 0 : index
    %0 = vector.load %arg3[%c0, %c0_0] : memref<8x128xf32, #tpu.memory_space<vmem>>, vector<8x128xf32>
    %1 = arith.truncf %0 : vector<8x128xf32> to vector<8x128xbf16>
    %c0_1 = arith.constant 0 : index
    %c0_2 = arith.constant 0 : index
    %2 = vector.load %arg4[%c0_1, %c0_2] : memref<128x128xbf16, #tpu.memory_space<vmem>>, vector<128x128xbf16>
    %cst = arith.constant dense<0.000000e+00> : vector<8x128xf32>
    %3 = tpu.matmul %1, %2, %cst {dimension_numbers = #tpu.dot_dimension_numbers<[1], [0], [0], [1], [0, 0, 1, 1], [], []>} : vector<8x128xbf16>, vector<128x128xbf16>, vector<8x128xf32> -> vector<8x128xf32>
    %c0_i32 = arith.constant 0 : i32
    %4 = arith.cmpi eq, %arg1, %c0_i32 : i32
    %5 = arith.extui %4 : i1 to i32
    %c0_i32_3 = arith.constant 0 : i32
    %6 = arith.cmpi ne, %5, %c0_i32_3 : i32
    scf.if %6 {
      %c0_8 = arith.constant 0 : index
      %c0_9 = arith.constant 0 : index
      %13 = vector.load %arg5[%c0_8, %c0_9] : memref<8x128xf32, #tpu.memory_space<vmem>>, vector<8x128xf32>
      tpu.vector_store %arg5[%c0_8, %c0_9], %3 {strides = array<i32>} : memref<8x128xf32, #tpu.memory_space<vmem>>, vector<8x128xf32>,
    } else {
    }
    %c0_i32_4 = arith.constant 0 : i32
    %7 = arith.cmpi ne, %arg1, %c0_i32_4 : i32
    %8 = arith.extui %7 : i1 to i32
    %c0_i32_5 = arith.constant 0 : i32
    %9 = arith.cmpi ne, %8, %c0_i32_5 : i32
    scf.if %9 {
      %c0_8 = arith.constant 0 : index
      %c0_9 = arith.constant 0 : index
      %13 = vector.load %arg5[%c0_8, %c0_9] : memref<8x128xf32, #tpu.memory_space<vmem>>, vector<8x128xf32>
      %14 = arith.addf %13, %3 : vector<8x128xf32>
      %c0_10 = arith.constant 0 : index
      %c0_11 = arith.constant 0 : index
      %15 = vector.load %arg5[%c0_10, %c0_11] : memref<8x128xf32, #tpu.memory_space<vmem>>, vector<8x128xf32>
      tpu.vector_store %arg5[%c0_10, %c0_11], %14 {strides = array<i32>} : memref<8x128xf32, #tpu.memory_space<vmem>>, vector<8x128xf32>,
    } else {
    }
    %c0_i32_6 = arith.constant 0 : i32
    %10 = arith.cmpi eq, %arg1, %c0_i32_6 : i32
    %11 = arith.extui %10 : i1 to i32
    %c0_i32_7 = arith.constant 0 : i32
    %12 = arith.cmpi ne, %11, %c0_i32_7 : i32
    scf.if %12 {
      %c0_8 = arith.constant 0 : index
      %c0_9 = arith.constant 0 : index
      %13 = vector.load %arg5[%c0_8, %c0_9] : memref<8x128xf32, #tpu.memory_space<vmem>>, vector<8x128xf32>
      %14 = tpu.iota {dimensions = array<i32: 1>} : vector<8x128xi32>
      %c16_i32 = arith.constant 16 : i32
      %15 = vector.broadcast %c16_i32 : i32 to vector<8x128xi32>
      %16 = arith.cmpi slt, %14, %15 : vector<8x128xi32>
      %cst_10 = arith.constant 0xFF800000 : f32
      %17 = vector.broadcast %cst_10 : f32 to vector<8x128xf32>
      %18 = arith.select %16, %13, %17 : vector<8x128xi1>, vector<8x128xf32>
      %cst_11 = arith.constant dense<0xFF800000> : vector<8xf32>
      %19 = vector.multi_reduction <maximumf>, %18, %cst_11 [1] : vector<8x128xf32> to vector<8xf32>
      %20 = vector.shape_cast %19 : vector<8xf32> to vector<8x1xf32>
      %21 = vector.broadcast %20 : vector<8x1xf32> to vector<8x128xf32>
      %22 = arith.subf %18, %21 : vector<8x128xf32>
      %c0_12 = arith.constant 0 : index
      %23 = memref.load %arg2[%c0_12] : memref<1xf32, #tpu.memory_space<smem>>
      %24 = vector.broadcast %23 : f32 to vector<8x128xf32>
      %25 = arith.mulf %22, %24 : vector<8x128xf32>
      %26 = math.exp %25 : vector<8x128xf32>
      %cst_13 = arith.constant dense<0.000000e+00> : vector<8xf32>
      %27 = vector.multi_reduction <add>, %26, %cst_13 [1] : vector<8x128xf32> to vector<8xf32>
      %28 = vector.shape_cast %27 : vector<8xf32> to vector<8x1xf32>
      %29 = vector.broadcast %28 : vector<8x1xf32> to vector<8x128xf32>
      %30 = arith.divf %26, %29 : vector<8x128xf32>
      %c0_14 = arith.constant 0 : index
      %c0_15 = arith.constant 0 : index
      %31 = vector.load %arg5[%c0_14, %c0_15] : memref<8x128xf32, #tpu.memory_space<vmem>>, vector<8x128xf32>
      tpu.vector_store %arg5[%c0_14, %c0_15], %30 {strides = array<i32>} : memref<8x128xf32, #tpu.memory_space<vmem>>, vector<8x128xf32>,
    } else {
    }
    return
  }
  func.func @transform_0(%arg0: i32, %arg1: i32, %arg2: memref<1xf32, #tpu.memory_space<smem>>) -> (i32, i32) {
    %c0_i32 = arith.constant 0 : i32
    return %arg0, %arg1 : i32, i32
  }
  func.func @transform_1(%arg0: i32, %arg1: i32, %arg2: memref<1xf32, #tpu.memory_space<smem>>) -> (i32, i32) {
    %c0_i32 = arith.constant 0 : i32
    %c0_i32_0 = arith.constant 0 : i32
    return %arg1, %c0_i32 : i32, i32
  }
  func.func @transform_2(%arg0: i32, %arg1: i32, %arg2: memref<1xf32, #tpu.memory_space<smem>>) -> (i32, i32) {
    %c0_i32 = arith.constant 0 : i32
    %c0_i32_0 = arith.constant 0 : i32
    return %arg0, %c0_i32 : i32, i32
  }
}

</mosaic_0001>

<bundles_post_ra>
// kernel: tpu_custom_call.1
= control target key start
LH: loop header
LB: loop body
LE: loop exit
PB: predicated region body
PF: predicated region fallthrough
CT: control target
= control target key end

     0   :  { %9 = vsyncpa [#allocation5], 0  ;;  %s397_s0 = inlined_call_operand.<no memory space> [shape: f32[1], index: 0, kind: input, shape index: {}]   ;;  %s398_s1 = inlined_call_operand.hbm [shape: f32[8,128], index: 1, kind: input, shape index: {}]   ;;  %s399_s2 = inlined_call_operand.hbm [shape: bf16[128,128], index: 2, kind: input, shape index: {}]   ;;  %s400_s3 = inlined_call_operand.hbm [shape: f32[8,128], index: 3, kind: output, shape index: {}]  }
   0x1   :  { %10 = vsyncpa [#allocation8], 0 }
   0x2   :  { %11 = vsyncpa [#allocation6], 0  ;;  %s324_s12 = smov [#allocation4]   ;;  %s325_s14 = smov [#allocation7]  }
   0x3   :  { %s18_s13 = sshll.u32 %s324_s12, 4  ;;  %s27_s15 = sshll.u32 %s325_s14, 4  ;;  %s19_s13 = int_to_ptr.vmem [resolvable:$true] %s18_s13  ;;  %s351_s15 = int_to_ptr.vmem [resolvable:$true] %s27_s15 }
   0x4   :  { %s252_s18 = scalar_lea.hbm %s398_s1, 128 }
   0x5   :  { %p253_p0 = scmp.ne.s32.totalorder %s398_s1, %s252_s18  ;;  %p256_p1 = scmp.lt.u32.totalorder %s252_s18, %s398_s1 }
   0x7   :  { %p258_p2 = pnand %p256_p1, %p253_p0 }
   0x9   :  { %261 = shalt.err (!%p258_p2)
}
   0xa   :  { %s262_s23 = scalar_lea.vmem %s19_s13, 128  ;;  %p267_p4 = scmp.lt.s32.totalorder %s19_s13, %s19_s13 }
   0xb   :  { %p263_p3 = scmp.ne.s32.totalorder %s19_s13, %s262_s23  ;;  %p268_p5 = scmp.lt.s32.totalorder %s262_s23, %s262_s23 }
   0xd   :  { %p269_p6 = por %p268_p5, %p267_p4 }
   0xf   :  { %p270_p7 = pnand %p269_p6, %p263_p3 }
  0x11   :  { %273 = shalt.err (!%p270_p7)
}
  0x12   :  { %21 = dma.hbm_to_vmem [thread:$0]  %s398_s1, 128, %s19_s13, [#allocation5]  }
  0x13   :  { %s274_s28 = scalar_lea.hbm %s399_s2, 1024 }
  0x14   :  { %p275_p8 = scmp.ne.s32.totalorder %s399_s2, %s274_s28  ;;  %p278_p9 = scmp.lt.u32.totalorder %s274_s28, %s399_s2 }
  0x16   :  { %p280_p10 = pnand %p278_p9, %p275_p8 }
  0x18   :  { %283 = shalt.err (!%p280_p10)
}
  0x19   :  { %s284_s6 = scalar_lea.vmem %s351_s15, 1024  ;;  %p289_p12 = scmp.lt.s32.totalorder %s351_s15, %s351_s15 }
  0x1a   :  { %p285_p11 = scmp.ne.s32.totalorder %s351_s15, %s284_s6  ;;  %p290_p13 = scmp.lt.s32.totalorder %s284_s6, %s284_s6 }
  0x1c   :  { %p291_p0 = por %p290_p13, %p289_p12 }
  0x1e   :  { %p292_p1 = pnand %p291_p0, %p285_p11 }
  0x20   :  { %295 = shalt.err (!%p292_p1)
}
  0x21   :  { %s326_s1 = smov 64   ;;  %s327_s7 = smov 4  }
  0x22   :  { %33 = dma.hbm_to_vmem [thread:$0]  %s399_s2, 1024, %s351_s15, [#allocation8], %s326_s1, %s326_s1, %s327_s7  }
  0x23   :  { %318 = dma.done.wait [#allocation5], 128  }
  0x24   :  { %319 = vsyncadd [#allocation5], 4294967168 }
  0x25   :  { %320 = dma.done.wait [#allocation8], 1024  }
  0x26   :  { %321 = vsyncadd [#allocation8], 4294966272  ;;  %v328_v0 = vmov 0.0   ;;  %vm329_vm0 = vmmov 0   ;;  %v240_v1 = vld [vmem:[#allocation7] sm:$0xff]   ;;  %v241_v2 = vld [vmem:[#allocation7 + $0x8] sm:$0xff]   ;;  %v163_v11 = vlaneseq  ;;  %v171_v18 = vstv %s397_s0 }
  0x27   :  { %213 = vmatprep.subr.bf16.mxu0 %v328_v0  ;;  %229 = vmatprep.mubr.msk.bf16.mxu0 %vm329_vm0, %v328_v0  ;;  %v242_v3 = vld [vmem:[#allocation7 + $0x10] sm:$0xff]   ;;  %v243_v4 = vld [vmem:[#allocation7 + $0x18] sm:$0xff]   ;;  %v244_v5 = vld [vmem:[#allocation7 + $0x20] sm:$0xff]   ;;  %s330_s11 = smov [#allocation9]  }
  0x28   :  { %214 = vmatpush3.bf16.msra.mxu0 %v240_v1  ;;  %v245_v6 = vld [vmem:[#allocation7 + $0x28] sm:$0xff]   ;;  %v246_v7 = vld [vmem:[#allocation7 + $0x30] sm:$0xff]   ;;  %v247_v8 = vld [vmem:[#allocation7 + $0x38] sm:$0xff]   ;;  %v164_v12 = vand.u32 127, %v163_v11  ;;  %s186_s12 = sshll.u32 %s330_s11, 4  ;;  %s187_s12 = int_to_ptr.vmem [resolvable:$true] %s186_s12 }
  0x29   :  { %215 = vmatprep.subr.bf16.mxu0 %v328_v0  ;;  %v41_v9 = vld [vmem:[#allocation4] sm:$0xff]  ;;  %s296_s13 = scalar_lea.vmem %s187_s12, 128  ;;  %p301_p3 = scmp.lt.s32.totalorder %s187_s12, %s187_s12 }
  0x2a   :  { %v42_v10 = vpack.c.bf16 %v41_v9, %v41_v9  ;;  %vm165_vm1 = vcmp.lt.s32.totalorder %v164_v12, 16  ;;  %p297_p2 = scmp.ne.s32.totalorder %s187_s12, %s296_s13  ;;  %p302_p4 = scmp.lt.s32.totalorder %s296_s13, %s296_s13 }
  0x2c   :  { %216 = vmatpush3.bf16.msra.mxu0 %v241_v2  ;;  %p303_p5 = por %p302_p4, %p301_p3 }
  0x2d   :  { %217 = vmatprep.subr.bf16.mxu0 %v328_v0 }
  0x2e   :  { %p304_p6 = pnand %p303_p5, %p297_p2 }
  0x30   :  { %218 = vmatpush3.bf16.msra.mxu0 %v242_v3 }
  0x31   :  { %219 = vmatprep.subr.bf16.mxu0 %v328_v0 }
  0x34   :  { %220 = vmatpush3.bf16.msra.mxu0 %v243_v4 }
  0x35   :  { %221 = vmatprep.subr.bf16.mxu0 %v328_v0 }
  0x38   :  { %222 = vmatpush3.bf16.msra.mxu0 %v244_v5 }
  0x39   :  { %223 = vmatprep.subr.bf16.mxu0 %v328_v0 }
  0x3c   :  { %224 = vmatpush3.bf16.msra.mxu0 %v245_v6 }
  0x3d   :  { %225 = vmatprep.subr.bf16.mxu0 %v328_v0 }
  0x40   :  { %226 = vmatpush3.bf16.msra.mxu0 %v246_v7 }
  0x41   :  { %227 = vmatprep.subr.bf16.mxu0 %v328_v0 }
  0x44   :  { %228 = vmatpush3.bf16.msra.mxu0 %v247_v8 }
  0x47   :  { %230 = vmatmul.mubr.bf16.vlgmr.msra.gmra.mrb[0].mxu0 %v42_v10 }
 0x11a   :  { %v141_v13 = vpop.f32.mrb[0].mxu0 }
 0x11b   :  { %v231_v14 = vpop.f32.mrb[1].mxu0  ;;  %v166_v15 = vsel %vm165_vm1, %v141_v13, -inf }
 0x11c   :  { %v144_v16 = vpop.f32.mrb[2].mxu0  ;;  %167 = vmax.xlane.f32.xlu0 %v166_v15 }
 0x11d   :  { %v232_v17 = vpop.f32.mrb[3].mxu0 }
 0x1a9   :  { %v168_v19 = vpop.xlane.xlu0 %167 }
 0x1aa   :  { %v169_v20 = vsub.f32 %v166_v15, %v168_v19 }
 0x1ac   :  { %v172_v21 = vmul.f32 %v171_v18, %v169_v20 }
 0x1ae   :  { %v173_v22 = vmul.f32 1.442695, %v172_v21 }
 0x1b0   :  { %248 = vpow2.f32 %v173_v22 }
 0x1ba   :  { %v249_v23 = vpop.eup %248 }
 0x1bb   :  { %175 = vadd.xlane.f32.xlu0 %v249_v23 }
 0x248   :  { %v176_v24 = vpop.xlane.xlu0 %175 }
 0x249   :  { %250 = vrcp.f32 %v176_v24 }
 0x253   :  { %v251_v25 = vpop.eup %250 }
 0x254   :  { %v178_v26 = vmul.f32 %v251_v25, %v249_v23 }
 0x256   :  { %179 = vst [vmem:[#allocation9] sm:$0xff] %v178_v26 }
 0x257   :  { %307 = shalt.err (!%p304_p6)
}
 0x258   :  { %s308_s15 = scalar_lea.hbm %s400_s3, 128 }
 0x259   :  { %p309_p7 = scmp.ne.s32.totalorder %s400_s3, %s308_s15  ;;  %p312_p8 = scmp.lt.u32.totalorder %s308_s15, %s400_s3 }
 0x25b   :  { %p314_p9 = pnand %p312_p8, %p309_p7 }
 0x25d   :  { %317 = shalt.err (!%p314_p9)
}
 0x25e   :  { %189 = dma.vmem_to_hbm [thread:$0]  %s187_s12, 128, %s400_s3, [#allocation6]  }
 0x25f   :  { %322 = dma.done.wait [#allocation6], 128  }
 0x260   :  { %323 = vsyncadd [#allocation6], 4294967168 }
 0x261   :  { %193 = vsyncpa [#allocation5], 1 }
 0x262   :  { %194 = vsyncpa [#allocation8], 1 }
 0x263   :  { %195 = vsyncpa [#allocation6], 1 }

</bundles_post_ra>
